<compile_context>
chip_gen: v7x
topology: tpu7x:2x2x1
jax: 0.10.0
libtpu: 0.0.40
codegen_flags: <defaults>
</compile_context>

<pallas_src>
import jax
import jax.numpy as jnp
from jax.experimental import pallas as pl
from jax.experimental.pallas import tpu as pltpu


# Budget for the double-buffered x + out tiles (2 bufs each): conservative
# enough for v5e's scoped VMEM once vmem_limit_bytes is raised to 32 MiB, and
# far under v7x's 64 MiB physical VMEM.
_VMEM_TILE_BUDGET_BYTES = 16 * 1024 * 1024
_VMEM_LIMIT_BYTES = 32 * 1024 * 1024


def _inverse_affine_kernel(x_ref, inv_scale_ref, bias_ref, out_ref):
    """out = x * inv_scale + bias  (== (x - shift) / scale), one VPU FMA/elem."""
    out_ref[...] = x_ref[...] * inv_scale_ref[...] + bias_ref[...]


def _choose_batch_tile(B, D, itemsize, max_tile):
    """Largest multiple-of-8 batch tile whose double buffers fit the budget."""
    # 2 double-buffered input tiles + 2 double-buffered output tiles.
    cap = _VMEM_TILE_BUDGET_BYTES // (4 * D * itemsize)
    cap = max(8, (cap // 8) * 8)
    b_pad8 = ((B + 7) // 8) * 8
    tb = min(cap, max_tile, b_pad8)
    return max(8, (tb // 8) * 8)


def inverse_transform_forward(x, shift, scale, *, max_batch_tile=4096):
    """InverseTransform(AffineTransform(shift, scale)).forward(x).

    Args:
        x:     [B, D] float32 inputs.
        shift: [D]    float32 affine shift of the wrapped transform.
        scale: [D]    float32 affine scale of the wrapped transform (nonzero).
        max_batch_tile: optional cap on the batch tile (testing / tuning knob).

    Returns:
        (outputs [B, D], logabsdet [B])
    """
    B, D = x.shape
    itemsize = jnp.dtype(x.dtype).itemsize
    tb = _choose_batch_tile(B, D, itemsize, max_batch_tile)

    # Pad the batch so every tile is full (keeps all stores unmasked).
    b_pad = pl.cdiv(B, tb) * tb
    x_in = x if b_pad == B else jnp.pad(x, ((0, b_pad - B), (0, 0)))

    # O(D) parameter preprocessing in the wrapper (params only, never the
    # [B, D] tensor), so the kernel inner loop is a single FMA per element.
    inv_scale = 1.0 / scale
    inv_scale2d = inv_scale.astype(x.dtype).reshape(1, D)
    bias2d = (-shift * inv_scale).astype(x.dtype).reshape(1, D)

    grid = (b_pad // tb,)

    out = pl.pallas_call(
        _inverse_affine_kernel,
        out_shape=jax.ShapeDtypeStruct((b_pad, D), x.dtype),
        grid_spec=pltpu.PrefetchScalarGridSpec(
            num_scalar_prefetch=0,
            grid=grid,
            in_specs=[
                pl.BlockSpec((tb, D), lambda i: (i, 0)),
                # Constant block index -> params stay resident in VMEM,
                # no per-step re-DMA.
                pl.BlockSpec((1, D), lambda i: (0, 0)),
                pl.BlockSpec((1, D), lambda i: (0, 0)),
            ],
            out_specs=pl.BlockSpec((tb, D), lambda i: (i, 0)),
        ),
        compiler_params=pltpu.CompilerParams(
            dimension_semantics=("parallel",),   # lets v7x shard over 2 TCs
            vmem_limit_bytes=_VMEM_LIMIT_BYTES,
        ),
    )(x_in, inv_scale2d, bias2d)

    if b_pad != B:
        out = out[:B]

    # logabsdet of the inverse elementwise-affine transform is data-independent:
    # -sum_d log|scale_d|, identical for every sample. Computed in plain JAX
    # (O(D)) and broadcast — avoids a lane-width-1 kernel output.
    lad = (-jnp.sum(jnp.log(jnp.abs(scale)))).astype(jnp.float32)
    logabsdet = jnp.full((B,), lad, dtype=jnp.float32)
    return out, logabsdet


def _reference(x, shift, scale):
    """Plain-JAX reference (mirrors torch semantics of the wrapped inverse)."""
    out = (x - shift[None, :]) / scale[None, :]
    lad = -jnp.sum(jnp.log(jnp.abs(scale)))
    return out, jnp.full((x.shape[0],), lad, dtype=jnp.float32)


if __name__ == "__main__":
    key = jax.random.PRNGKey(0)
    # Small shapes; B deliberately NOT a multiple of the tile to exercise the
    # padding path, and max_batch_tile=16 to exercise a multi-step grid.
    B, D = 50, 128

    x = jax.random.normal(key, (B, D), dtype=jnp.float32)
    # Deterministic synthetic parameters for the wrapped AffineTransform.
    shift = jnp.linspace(-1.0, 1.0, D, dtype=jnp.float32)
    scale = 0.5 + 0.01 * jnp.arange(D, dtype=jnp.float32)  # strictly positive

    out, logabsdet = inverse_transform_forward(x, shift, scale, max_batch_tile=16)
    out = jax.block_until_ready(out)
    logabsdet = jax.block_until_ready(logabsdet)

    ref_out, ref_lad = _reference(x, shift, scale)
    assert out.shape == (B, D) and logabsdet.shape == (B,)
    assert jnp.allclose(out, ref_out, rtol=1e-5, atol=1e-5)
    assert jnp.allclose(logabsdet, ref_lad, rtol=1e-5, atol=1e-5)

    print("KERNEL_OK")
</pallas_src>

<mosaic_0001>
module attributes {stable_mosaic.version = 11 : i64} {
  func.func @_inverse_affine_kernel(%arg0: i32, %arg1: memref<16x128xf32, #tpu.memory_space<vmem>>, %arg2: memref<1x128xf32, #tpu.memory_space<vmem>>, %arg3: memref<1x128xf32, #tpu.memory_space<vmem>>, %arg4: memref<16x128xf32, #tpu.memory_space<vmem>>) attributes {dimension_semantics = [#tpu.dimension_semantics<parallel>], iteration_bounds = array<i64: 4>, scalar_prefetch = 0 : i64, scratch_operands = 0 : i64, tpu.core_type = #tpu.core_type<tc>, window_params = [{transform_indices = @transform_0, window_bounds = array<i64: 16, 128>}, {pipeline_mode = #tpu.pipeline_mode<synchronous>, transform_indices = @transform_1, window_bounds = array<i64: 1, 128>}, {pipeline_mode = #tpu.pipeline_mode<synchronous>, transform_indices = @transform_2, window_bounds = array<i64: 1, 128>}, {transform_indices = @transform_3, window_bounds = array<i64: 16, 128>}]} {
    %c0 = arith.constant 0 : index
    %c0_0 = arith.constant 0 : index
    %0 = vector.load %arg1[%c0, %c0_0] : memref<16x128xf32, #tpu.memory_space<vmem>>, vector<16x128xf32>
    %c0_1 = arith.constant 0 : index
    %c0_2 = arith.constant 0 : index
    %1 = vector.load %arg2[%c0_1, %c0_2] : memref<1x128xf32, #tpu.memory_space<vmem>>, vector<1x128xf32>
    %2 = vector.broadcast %1 : vector<1x128xf32> to vector<16x128xf32>
    %3 = arith.mulf %0, %2 : vector<16x128xf32>
    %c0_3 = arith.constant 0 : index
    %c0_4 = arith.constant 0 : index
    %4 = vector.load %arg3[%c0_3, %c0_4] : memref<1x128xf32, #tpu.memory_space<vmem>>, vector<1x128xf32>
    %5 = vector.broadcast %4 : vector<1x128xf32> to vector<16x128xf32>
    %6 = arith.addf %3, %5 : vector<16x128xf32>
    %c0_5 = arith.constant 0 : index
    %c0_6 = arith.constant 0 : index
    %7 = vector.load %arg4[%c0_5, %c0_6] : memref<16x128xf32, #tpu.memory_space<vmem>>, vector<16x128xf32>
    tpu.vector_store %arg4[%c0_5, %c0_6], %6 {strides = array<i32>} : memref<16x128xf32, #tpu.memory_space<vmem>>, vector<16x128xf32>,
    return
  }
  func.func @transform_0(%arg0: i32) -> (i32, i32) {
    %c0_i32 = arith.constant 0 : i32
    %c0_i32_0 = arith.constant 0 : i32
    return %arg0, %c0_i32 : i32, i32
  }
  func.func @transform_1(%arg0: i32) -> (i32, i32) {
    %c0_i32 = arith.constant 0 : i32
    %c0_i32_0 = arith.constant 0 : i32
    %c0_i32_1 = arith.constant 0 : i32
    return %c0_i32, %c0_i32_0 : i32, i32
  }
  func.func @transform_2(%arg0: i32) -> (i32, i32) {
    %c0_i32 = arith.constant 0 : i32
    %c0_i32_0 = arith.constant 0 : i32
    %c0_i32_1 = arith.constant 0 : i32
    return %c0_i32, %c0_i32_0 : i32, i32
  }
  func.func @transform_3(%arg0: i32) -> (i32, i32) {
    %c0_i32 = arith.constant 0 : i32
    %c0_i32_0 = arith.constant 0 : i32
    return %arg0, %c0_i32 : i32, i32
  }
}

</mosaic_0001>

<bundles_post_ra>
// kernel: tpu_custom_call.1
= control target key start
LH: loop header
LB: loop body
LE: loop exit
PB: predicated region body
PF: predicated region fallthrough
CT: control target
= control target key end

     0   :  { %8 = vsyncpa [#allocation3], 0  ;;  %s658_s0 = inlined_call_operand.hbm [shape: f32[64,128], index: 0, kind: input, shape index: {}]   ;;  %s659_s1 = inlined_call_operand.vmem [shape: f32[1,128], index: 1, kind: input, shape index: {}]   ;;  %s660_s2 = inlined_call_operand.vmem [shape: f32[1,128], index: 2, kind: input, shape index: {}]   ;;  %s661_s3 = inlined_call_operand.hbm [shape: f32[64,128], index: 3, kind: output, shape index: {}]  }
   0x1   :  { %10 = vsyncpa [#allocation3 + $0x1], 0 }
   0x2   :  { %11 = vsyncpa [#allocation4], 0 }
   0x3   :  { %13 = vsyncpa [#allocation4 + $0x1], 0  ;;  %s492_s12 = smov 0   ;;  %s494_s13 = smov 0  }
   0x4   :  { %s496_s14 = smov 0   ;;  %s498_s15 = smov 0  }
   0x5 LB: > { %s513_s16 = sadd.s32 4294967295, %s464_s15   ;;  %s300_s17 = sadd.s32 4294967294, %s464_s15   ;;  %s464_s15 = sphi %s498_s15, %s673_s15   ;;  %s460_s14 = sphi %s496_s14, %s672_s14   ;;  %s456_s13 = sphi %s494_s13, %s671_s13   ;;  %s452_s12 = sphi %s492_s12, %s670_s12  }
   0x6   : > { %s517_s18 = sadd.s32 1, %s464_s15   ;;  %s26_s19 = sadd.s32 1, %s460_s14 }
   0x7   : > { %s23_s20 = ssub.s32 %s464_s15, %s517_s18  ;;  %p33_p0 = scmp.ne.s32.totalorder %s460_s14, %s456_s13 }
   0x8   : > { %p24_p1 = scmp.eq.s32.totalorder %s23_s20, 0  ;;  %p34_p2 = scmp.eq.s32.totalorder %s464_s15, 0 }
   0x9   : > { %p39_p3 = scmp.ne.s32.totalorder %s456_s13, %s452_s12  ;;  %p40_p4 = scmp.eq.s32.totalorder %s513_s16, 0 }
   0xa   : > { %s529_s21 = scalar_select %p24_p1, %s460_s14, %s26_s19  }
   0xb   : > { %p531_p5 = por %p34_p2, %p33_p0  ;;  %p535_p6 = por %p40_p4, %p39_p3 }
   0xc   : > { %p105_p7 = scmp.eq.s32.totalorder %s513_s16, 3  ;;  %p111_p8 = scmp.eq.s32.totalorder %s300_s17, 3 }
   0xd   : > { %p330_p9 = scmp.lt.s32.totalorder %s464_s15, 4  ;;  %s137_s26 = sand.u32 1, %s460_s14  }
   0xe   : > { %p541_p10 = por %p105_p7, %p33_p0  ;;  %p545_p11 = por %p111_p8, %p39_p3 }
   0xf   : > { %s316_s27 = sshll.u32 %s464_s15, 8  ;;  %s303_s28 = sshll.u32 %s137_s26, 4 }
  0x10   : > { %s665_s24 = scalar_select %p541_p10, 1, 0 }
  0x11   : > { %s666_s25 = scalar_select %p545_p11, 1, 0 }
  0x12   : > { %s554_s4 = scalar_lea.hbm %s658_s0, %s316_s27  ;;  %s141_s5 = scalar_lea.vmem [#allocation2], %s303_s28 }
  0x13   : > { %s148_s6 = sshll.u32 %s141_s5, 4  ;;  %p558_p12 = pnand %p330_p9, %p531_p5  ;;  %s562_s6 = int_to_ptr.vmem [resolvable:$true] %s148_s6 }
  0x14   : > { %s564_s8 = scalar_lea.sflag [#allocation3], %s137_s26  ;;  %s368_s9 = scalar_lea.hbm %s554_s4, 256 }
  0x15   : > { %p369_p13 = scmp.ne.s32.totalorder %s554_s4, %s368_s9  ;;  %p370_p0 = pneg %p558_p12 }
  0x16   : > { %s373_s17 = scalar_lea.hbm %s658_s0, 1024  ;;  %p374_p3 = scmp.lt.u32.totalorder %s554_s4, %s658_s0 }
  0x17   : > { %p371_p1 = pnand %p370_p0, %p369_p13  ;;  %p375_p4 = scmp.lt.u32.totalorder %s373_s17, %s368_s9 }
  0x18   : > { %p377_p7 = scmp.lt.u32.totalorder %s368_s9, %s554_s4 }
  0x19   : > { %p372_p2 = pneg %p371_p1  ;;  %p376_p5 = por %p375_p4, %p374_p3 }
  0x1b   : > { %p378_p8 = por %p377_p7, %p376_p5 }
  0x1d   : > { %p379_p9 = pnand %p378_p8, %p372_p2 }
  0x1f   : > { %382 = shalt.err (!%p379_p9)
}
  0x20   : > { %s383_s22 = scalar_lea.vmem %s562_s6, 256  ;;  %s466_s26 = smov [#allocation2]  }
  0x21   : > { %p384_p13 = scmp.ne.s32.totalorder %s562_s6, %s383_s22  ;;  %s388_s27 = sshll.u32 %s466_s26, 4  ;;  %s389_s27 = int_to_ptr.vmem [resolvable:$false] %s388_s27 }
  0x22   : > { %s390_s28 = scalar_lea.vmem %s389_s27, 512  ;;  %p391_p10 = scmp.lt.s32.totalorder %s562_s6, %s389_s27 }
  0x23   : > { %p386_p1 = pnand %p384_p13, %p370_p0  ;;  %p392_p3 = scmp.lt.s32.totalorder %s390_s28, %s383_s22 }
  0x25   : > { %p387_p11 = pneg %p386_p1  ;;  %p393_p4 = por %p392_p3, %p391_p10 }
  0x27   : > { %p394_p5 = pnand %p393_p4, %p387_p11 }
  0x29   : > { %397 = shalt.err (!%p394_p5)
}
  0x2a   : > { %s467_s29 = smov 128   ;;  %s468_s30 = smov 8  }
  0x2b   : > { %325 = dma.hbm_to_vmem [thread:$0]  (!%p558_p12), %s554_s4, 256, %s562_s6, %s564_s8, %s467_s29, %s467_s29, %s468_s30  }
  0x2c   : > { %p306_p0 = scmp.ge.s32.totalorder %s464_s15, 1  ;;  %p156_p2 = scmp.lt.s32.totalorder %s464_s15, 5 }
  0x2e   : > { %p157_p7 = pnand %p306_p0, %p156_p2 }
  0x2f   : > { %s595_s5 = sand.u32 (!%p157_p7), 1, %s456_s13  }
  0x30   : > { %160 = sbr.rel (%p157_p7) target bundleno = 83 (0x53), region = 32  ;;  %s307_s9 = sshll.u32 (!%p157_p7), %s595_s5, 4 }
  0x31   : > { %s163_s10 = scalar_lea.sflag (!%p157_p7), [#allocation3], %s595_s5  ;;  %s166_s11 = scalar_lea.vmem (!%p157_p7), [#allocation2], %s307_s9 }
  0x37   : > { %443 = dma.done.wait (%p535_p6), %s163_s10, 256  }
  0x38   : > { %445 = vsyncadd (%p535_p6), %s163_s10, 4294967040  ;;  %s188_s4 = scalar_lea.vmem [#allocation5], %s307_s9  ;;  %v191_v0 = vld [vmem:[%s166_s11] sm:$0xff]  ;;  %s317_s20 = sshll.u32 %s513_s16, 8  ;;  %v192_v4 = vld [vmem:[%s166_s11 + $0x8] sm:$0xff] }
  0x39   : > { %s227_s6 = sshll.u32 %s188_s4, 4  ;;  %v309_v1 = vld [vmem:[%s659_s1] ss:$0 sm:$0xff]  ;;  %s615_s26 = scalar_lea.hbm %s661_s3, %s317_s20  ;;  %s610_s6 = int_to_ptr.vmem [resolvable:$true] %s227_s6 }
  0x3a   : > { %v310_v2 = vld [vmem:[%s660_s2] ss:$0 sm:$0xff]  ;;  %v200_v3 = vmul.f32 %v309_v1, %v191_v0  ;;  %v201_v5 = vmul.f32 %v309_v1, %v192_v4  ;;  %s214_s27 = scalar_lea.sflag [#allocation4], %s595_s5  ;;  %s398_s28 = scalar_lea.vmem %s610_s6, 256 }
  0x3b   : > { %p399_p6 = scmp.ne.s32.totalorder %s610_s6, %s398_s28  ;;  %p668_p10 = scmp.ne.s32.totalorder %s665_s24, 0 }
  0x3c   : > { %v209_v6 = vadd.f32 %v310_v2, %v200_v3  ;;  %v210_v7 = vadd.f32 %v310_v2, %v201_v5  ;;  %s469_s16 = smov [#allocation5]  }
  0x3d   : > { %p400_p11 = pnand %p399_p6, %p668_p10  ;;  %s402_s29 = sshll.u32 %s469_s16, 4  ;;  %s403_s29 = int_to_ptr.vmem [resolvable:$false] %s402_s29 }
  0x3e   : > { %211 = vst [vmem:[%s188_s4] sm:$0xff] %v209_v6  ;;  %212 = vst [vmem:[%s188_s4 + $0x8] sm:$0xff] %v210_v7  ;;  %s404_s30 = scalar_lea.vmem %s403_s29, 512  ;;  %p405_p8 = scmp.lt.s32.totalorder %s610_s6, %s403_s29 }
  0x3f   : > { %p401_p12 = pneg %p400_p11  ;;  %p406_p9 = scmp.lt.s32.totalorder %s404_s30, %s398_s28 }
  0x41   : > { %p407_p13 = por %p406_p9, %p405_p8 }
  0x43   : > { %p408_p1 = pnand %p407_p13, %p401_p12 }
  0x45   : > { %411 = shalt.err (!%p408_p1)
}
  0x46   : > { %s412_s9 = scalar_lea.hbm %s615_s26, 256  ;;  %s416_s4 = scalar_lea.hbm %s661_s3, 1024 }
  0x47   : > { %p413_p3 = scmp.ne.s32.totalorder %s615_s26, %s412_s9  ;;  %p417_p0 = scmp.lt.u32.totalorder %s615_s26, %s661_s3 }
  0x48   : > { %p418_p2 = scmp.lt.u32.totalorder %s416_s4, %s412_s9  ;;  %p420_p6 = scmp.lt.u32.totalorder %s412_s9, %s615_s26 }
  0x49   : > { %p414_p4 = pnand %p413_p3, %p668_p10 }
  0x4a   : > { %p419_p7 = por %p418_p2, %p417_p0 }
  0x4b   : > { %p415_p5 = pneg %p414_p4 }
  0x4c   : > { %p421_p11 = por %p420_p6, %p419_p7 }
  0x4e   : > { %p422_p12 = pnand %p421_p11, %p415_p5 }
  0x50   : > { %425 = shalt.err (!%p422_p12)
}
  0x51   : > { %s470_s17 = smov 128   ;;  %s471_s19 = smov 8  }
  0x52   : > { %320 = dma.vmem_to_hbm [thread:$0]  (%p668_p10), %s610_s6, 256, %s615_s26, %s214_s27, %s470_s17, %s470_s17, %s471_s19  }
  0x53 PF: > { %p331_p8 = scmp.ge.s32.totalorder %s464_s15, 2  ;;  %s242_s20 = sand.u32 1, %s452_s12  }
  0x54   : > { %p669_p9 = scmp.ne.s32.totalorder %s666_s25, 0  ;;  %s243_s23 = scalar_lea.sflag [#allocation4], %s242_s20 }
  0x56   : > { %p327_p13 = pnand %p331_p8, %p669_p9 }
  0x58   : > { %447 = dma.done.wait (!%p327_p13), %s243_s23, 256  }
  0x59   : > { %449 = vsyncadd (!%p327_p13), %s243_s23, 4294967040  ;;  %p16_p1 = scmp.ge.s32.totalorder %s517_s18, 6   ;;  %s670_s12 = smov %s456_s13 }
  0x5a   : > { %s671_s13 = smov %s460_s14  ;;  %s672_s14 = smov %s529_s21 }
  0x5b   : > { %s673_s15 = smov %s517_s18  ;;  %18 = sbr.rel (!%p16_p1) target bundleno = 5 (0x5), region = 77 }
  0x62   :  { %248 = vsyncpa [#allocation3], 1 }
  0x63   :  { %250 = vsyncpa [#allocation3 + $0x1], 1 }
  0x64   :  { %251 = vsyncpa [#allocation4], 1 }
  0x65   :  { %253 = vsyncpa [#allocation4 + $0x1], 1 }

</bundles_post_ra>
